<compile_context>
chip_gen: v6e
topology: v6e:2x2x1
jax: 0.10.0
libtpu: 0.0.40
codegen_flags: <defaults>
</compile_context>

<pallas_src>
import functools

import jax
import jax.numpy as jnp
import numpy as np
from jax.experimental import pallas as pl
from jax.experimental.pallas import tpu as pltpu


# ---------------------------------------------------------------------------
# Kernel
# ---------------------------------------------------------------------------
def _block(x, p_ref, b2, ssel, bsz, H, W, Cin, Cout):
    """One Conv3x3(pad=1)+bias + MaxPool2x2 + ReLU block, batch-stacked rows.

    x     : (bsz*H, W*Cin) folded activations, rows are image-major (b*H + h),
            lanes are w*Cin + ci.
    p_ref : VMEM scratch (bsz*H, 3*W*Cin + 1) row-tap patches + ones lane.
    b2    : (3*W*Cin + 1, 2*(W//2)*Cout) folded conv matrix; last row = bias,
            columns carry both W-pool phases.
    ssel  : (bsz*H, bsz*H) block-diagonal 0/1 H-pool selection (even rows of
            every image first, then odd rows).
    returns (bsz*(H//2), (W//2)*Cout) folded output (next block's layout).
    """
    WC = W * Cin
    BH = bsz * H

    zrow = jnp.zeros((1, WC), jnp.float32)

    # Middle tap (input row h) and the constant bias lane.
    p_ref[:, WC:2 * WC] = x
    p_ref[:, 3 * WC:3 * WC + 1] = jnp.ones((BH, 1), jnp.float32)

    # Up / down taps, per image, with explicit zero boundary rows so taps
    # never leak across image boundaries.  Every scratch element is written
    # every step (no full-buffer zeroing, no reliance on step-0 init).
    for b in range(bsz):
        r0 = b * H
        p_ref[r0:r0 + 1, 0:WC] = zrow                              # di=0 pad
        p_ref[r0 + 1:r0 + H, 0:WC] = x[r0:r0 + H - 1, :]           # row h-1
        p_ref[r0:r0 + H - 1, 2 * WC:3 * WC] = x[r0 + 1:r0 + H, :]  # row h+1
        p_ref[r0 + H - 1:r0 + H, 2 * WC:3 * WC] = zrow             # di=2 pad

    # Conv (+bias) at every row, both W-pool phases in the columns: one MXU op.
    z = jnp.dot(p_ref[...], b2, preferred_element_type=jnp.float32)

    woc = (W // 2) * Cout
    wpool = jnp.maximum(z[:, :woc], z[:, woc:])        # max over W phases

    # H pooling: block-diagonal selection matmul gathers even rows of every
    # image then odd rows; row-slice max finishes the 2x2 pool.
    y = jnp.dot(ssel, wpool, preferred_element_type=jnp.float32)
    BHo = bsz * (H // 2)
    return jnp.maximum(jnp.maximum(y[:BHo, :], y[BHo:, :]), 0.0)   # ReLU last


def _encoder_kernel(x_ref, b2a, b2b, b2c, sa, sb, sc, o_ref, p1, p2, p3, *,
                    bsz):
    x = x_ref[...]                                                    # (B*16, 16)
    x = _block(x, p1, b2a[...], sa[...], bsz, 16, 16, 1, 2)           # (B*8, 16)
    x = _block(x, p2, b2b[...], sb[...], bsz, 8, 8, 2, 4)             # (B*4, 16)
    x = _block(x, p3, b2c[...], sc[...], bsz, 4, 4, 4, 8)             # (B*2, 16)
    o_ref[...] = x.astype(o_ref.dtype)


# ---------------------------------------------------------------------------
# One-time host-side constant folding (pure numpy; done once per params)
# ---------------------------------------------------------------------------
def _fold_conv(w_oihw, bias, W):
    """(Cout,Cin,3,3)+(Cout,) -> (3*W*Cin + 1, 2*(W//2)*Cout) folded matrix.

    Row index = di*(W*Cin) + w*Cin + ci (di = row tap), last row = bias.
    Col index = ph*(Wo*Cout) + jo*Cout + co (ph = W-pool phase).
    """
    w = np.asarray(w_oihw, np.float32)
    b = np.asarray(bias, np.float32)
    cout, cin = int(w.shape[0]), int(w.shape[1])
    wo = W // 2
    m = np.zeros((3 * W * cin + 1, 2 * wo * cout), np.float32)
    for di in range(3):
        for wcol in range(W):
            for ci in range(cin):
                r = di * W * cin + wcol * cin + ci
                for ph in range(2):
                    for jo in range(wo):
                        dj = wcol - 2 * jo - ph + 1        # kernel column tap
                        if 0 <= dj <= 2:
                            c0 = ph * wo * cout + jo * cout
                            m[r, c0:c0 + cout] = w[:, ci, di, dj]
    m[3 * W * cin, :] = np.tile(b, 2 * wo)                 # bias row
    return jnp.asarray(m)


def _hpool_select(bsz, H):
    """(bsz*H, bsz*H) block-diagonal 0/1 selection: even rows of every image
    first (rows [0 : bsz*Ho]), then odd rows (rows [bsz*Ho : bsz*H])."""
    ho = H // 2
    s = np.zeros((bsz * H, bsz * H), np.float32)
    for p in range(2):
        for b in range(bsz):
            for i in range(ho):
                s[p * bsz * ho + b * ho + i, b * H + 2 * i + p] = 1.0
    return jnp.asarray(s)


def pick_b_tile(n):
    """Whole batch in one grid step when small; otherwise 16 images per step
    (block-1 matmul M=256, native v6e/v7x MXU tile) which also keeps the grid
    length >= 2 so v7x megacore gets both TensorCores busy."""
    return n if n <= 16 else 16


def prepare_encoder(params, b_tile):
    """Fold weights/bias and build pooling-selection constants (run once)."""
    sizes = (16, 8, 4)
    return {
        "b2": tuple(_fold_conv(w, b, s) for (w, b), s in zip(params, sizes)),
        "ssel": tuple(_hpool_select(b_tile, s) for s in sizes),
    }


# ---------------------------------------------------------------------------
# Forward pass
# ---------------------------------------------------------------------------
@functools.partial(jax.jit, static_argnames=("b_tile",))
def encoder_forward(folded, x_nchw, *, b_tile):
    b2a, b2b, b2c = folded["b2"]
    sa, sb, sc = folded["ssel"]

    n = x_nchw.shape[0]
    n_pad = -(-n // b_tile) * b_tile

    # NCHW (C=1) -> folded, batch-stacked rows: (n_pad*16, 16).
    x = x_nchw.reshape(n, 16, 16).astype(jnp.float32)
    if n_pad != n:
        x = jnp.concatenate([x, jnp.zeros((n_pad - n, 16, 16), x.dtype)], 0)
    x = x.reshape(n_pad * 16, 16)

    grid_len = n_pad // b_tile

    out = pl.pallas_call(
        functools.partial(_encoder_kernel, bsz=b_tile),
        out_shape=jax.ShapeDtypeStruct((n_pad * 2, 16), jnp.float32),
        grid=(grid_len,),
        in_specs=[
            pl.BlockSpec((b_tile * 16, 16), lambda i: (i, 0)),           # x
            pl.BlockSpec((49, 32), lambda i: (0, 0)),                    # B2 b1
            pl.BlockSpec((49, 32), lambda i: (0, 0)),                    # B2 b2
            pl.BlockSpec((49, 32), lambda i: (0, 0)),                    # B2 b3
            pl.BlockSpec((b_tile * 16, b_tile * 16), lambda i: (0, 0)),  # ssel1
            pl.BlockSpec((b_tile * 8, b_tile * 8), lambda i: (0, 0)),    # ssel2
            pl.BlockSpec((b_tile * 4, b_tile * 4), lambda i: (0, 0)),    # ssel3
        ],
        out_specs=pl.BlockSpec((b_tile * 2, 16), lambda i: (i, 0)),
        scratch_shapes=[
            pltpu.VMEM((b_tile * 16, 49), jnp.float32),   # block-1 patches
            pltpu.VMEM((b_tile * 8, 49), jnp.float32),    # block-2 patches
            pltpu.VMEM((b_tile * 4, 49), jnp.float32),    # block-3 patches
        ],
        compiler_params=pltpu.CompilerParams(
            dimension_semantics=("parallel",)),
    )(x, b2a, b2b, b2c, sa, sb, sc)

    # (n_pad*2, 16) folded rows -> (N, H=2, W=2, C=8) -> NCHW (N, 8, 2, 2).
    out = out.reshape(n_pad, 2, 2, 8)[:n]
    return jnp.transpose(out, (0, 3, 1, 2))


# ---------------------------------------------------------------------------
# Params + pure-JAX reference
# ---------------------------------------------------------------------------
def init_params(key):
    """Deterministic params matching nn.Conv2d shapes (OIHW weights, bias)."""
    shapes = [((2, 1, 3, 3), (2,)), ((4, 2, 3, 3), (4,)), ((8, 4, 3, 3), (8,))]
    params = []
    for ws, bs in shapes:
        key, kw, kb = jax.random.split(key, 3)
        fan_in = ws[1] * ws[2] * ws[3]
        bound = 1.0 / np.sqrt(fan_in)
        w = jax.random.uniform(kw, ws, jnp.float32, -bound, bound)
        b = jax.random.uniform(kb, bs, jnp.float32, -bound, bound)
        params.append((w, b))
    return params


def encoder_reference(params, x_nchw):
    x = jnp.transpose(x_nchw, (0, 2, 3, 1))
    for w, b in params:
        n, h, wdim, cin = x.shape
        cout = w.shape[0]
        whwio = jnp.transpose(w, (2, 3, 1, 0))
        y = jax.lax.conv_general_dilated(
            x, whwio, window_strides=(1, 1), padding="SAME",
            dimension_numbers=("NHWC", "HWIO", "NHWC"))
        y = jnp.maximum(y + b.reshape(1, 1, 1, cout), 0.0)
        x = y.reshape(n, h // 2, 2, wdim // 2, 2, cout).max(axis=(2, 4))
    return jnp.transpose(x, (0, 3, 1, 2))


if __name__ == "__main__":
    key = jax.random.PRNGKey(0)
    key, kx = jax.random.split(key)
    # PyTorch Encoder expects single-channel NCHW input.
    x = jax.random.normal(kx, (2, 1, 16, 16), jnp.float32)
    params = init_params(key)

    b_tile = pick_b_tile(x.shape[0])
    folded = prepare_encoder(params, b_tile)   # one-time constant folding

    out = jax.block_until_ready(encoder_forward(folded, x, b_tile=b_tile))
    ref = jax.block_until_ready(encoder_reference(params, x))

    assert out.shape == (2, 8, 2, 2), out.shape
    assert np.allclose(np.asarray(out), np.asarray(ref), atol=1e-4, rtol=1e-4)
    print("KERNEL_OK")
</pallas_src>

<mosaic_0001>
module attributes {stable_mosaic.version = 11 : i64} {
  func.func @_encoder_kernel(%arg0: i32, %arg1: memref<32x16xf32, #tpu.memory_space<vmem>>, %arg2: memref<49x32xf32, #tpu.memory_space<vmem>>, %arg3: memref<49x32xf32, #tpu.memory_space<vmem>>, %arg4: memref<49x32xf32, #tpu.memory_space<vmem>>, %arg5: memref<32x32xf32, #tpu.memory_space<vmem>>, %arg6: memref<16x16xf32, #tpu.memory_space<vmem>>, %arg7: memref<8x8xf32, #tpu.memory_space<vmem>>, %arg8: memref<4x16xf32, #tpu.memory_space<vmem>>, %arg9: memref<32x49xf32, #tpu.memory_space<vmem>>, %arg10: memref<16x49xf32, #tpu.memory_space<vmem>>, %arg11: memref<8x49xf32, #tpu.memory_space<vmem>>) attributes {dimension_semantics = [#tpu.dimension_semantics<parallel>], iteration_bounds = array<i64: 1>, scalar_prefetch = 0 : i64, scratch_operands = 3 : i64, tpu.core_type = #tpu.core_type<tc>, window_params = [{transform_indices = @transform_0, window_bounds = array<i64: 32, 16>}, {pipeline_mode = #tpu.pipeline_mode<synchronous>, transform_indices = @transform_1, window_bounds = array<i64: 49, 32>}, {pipeline_mode = #tpu.pipeline_mode<synchronous>, transform_indices = @transform_2, window_bounds = array<i64: 49, 32>}, {pipeline_mode = #tpu.pipeline_mode<synchronous>, transform_indices = @transform_3, window_bounds = array<i64: 49, 32>}, {pipeline_mode = #tpu.pipeline_mode<synchronous>, transform_indices = @transform_4, window_bounds = array<i64: 32, 32>}, {pipeline_mode = #tpu.pipeline_mode<synchronous>, transform_indices = @transform_5, window_bounds = array<i64: 16, 16>}, {pipeline_mode = #tpu.pipeline_mode<synchronous>, transform_indices = @transform_6, window_bounds = array<i64: 8, 8>}, {transform_indices = @transform_7, window_bounds = array<i64: 4, 16>}]} {
    %c0 = arith.constant 0 : index
    %c0_0 = arith.constant 0 : index
    %0 = vector.load %arg1[%c0, %c0_0] : memref<32x16xf32, #tpu.memory_space<vmem>>, vector<32x16xf32>
    %c0_1 = arith.constant 0 : index
    %c0_2 = arith.constant 0 : index
    %1 = vector.load %arg2[%c0_1, %c0_2] : memref<49x32xf32, #tpu.memory_space<vmem>>, vector<49x32xf32>
    %c0_3 = arith.constant 0 : index
    %c0_4 = arith.constant 0 : index
    %2 = vector.load %arg5[%c0_3, %c0_4] : memref<32x32xf32, #tpu.memory_space<vmem>>, vector<32x32xf32>
    %cst = arith.constant 0.000000e+00 : f32
    %3 = vector.broadcast %cst : f32 to vector<1x16xf32>
    %c0_5 = arith.constant 0 : index
    %c16 = arith.constant 16 : index
    %4 = vector.load %arg9[%c0_5, %c16] : memref<32x49xf32, #tpu.memory_space<vmem>>, vector<32x16xf32>
    tpu.vector_store %arg9[%c0_5, %c16], %0 {strides = array<i32>} : memref<32x49xf32, #tpu.memory_space<vmem>>, vector<32x16xf32>,
    %cst_6 = arith.constant 1.000000e+00 : f32
    %5 = vector.broadcast %cst_6 : f32 to vector<32x1xf32>
    %c0_7 = arith.constant 0 : index
    %c48 = arith.constant 48 : index
    %6 = vector.load %arg9[%c0_7, %c48] : memref<32x49xf32, #tpu.memory_space<vmem>>, vector<32x1xf32>
    tpu.vector_store %arg9[%c0_7, %c48], %5 {strides = array<i32>} : memref<32x49xf32, #tpu.memory_space<vmem>>, vector<32x1xf32>,
    %c0_8 = arith.constant 0 : index
    %c0_9 = arith.constant 0 : index
    %7 = vector.load %arg9[%c0_8, %c0_9] : memref<32x49xf32, #tpu.memory_space<vmem>>, vector<1x16xf32>
    tpu.vector_store %arg9[%c0_8, %c0_9], %3 {strides = array<i32>} : memref<32x49xf32, #tpu.memory_space<vmem>>, vector<1x16xf32>,
    %8 = vector.extract_strided_slice %0 {offsets = [0, 0], sizes = [15, 16], strides = [1, 1]} : vector<32x16xf32> to vector<15x16xf32>
    %c1 = arith.constant 1 : index
    %c0_10 = arith.constant 0 : index
    %9 = vector.load %arg9[%c1, %c0_10] : memref<32x49xf32, #tpu.memory_space<vmem>>, vector<15x16xf32>
    tpu.vector_store %arg9[%c1, %c0_10], %8 {strides = array<i32>} : memref<32x49xf32, #tpu.memory_space<vmem>>, vector<15x16xf32>,
    %10 = vector.extract_strided_slice %0 {offsets = [1, 0], sizes = [15, 16], strides = [1, 1]} : vector<32x16xf32> to vector<15x16xf32>
    %c0_11 = arith.constant 0 : index
    %c32 = arith.constant 32 : index
    %11 = vector.load %arg9[%c0_11, %c32] : memref<32x49xf32, #tpu.memory_space<vmem>>, vector<15x16xf32>
    tpu.vector_store %arg9[%c0_11, %c32], %10 {strides = array<i32>} : memref<32x49xf32, #tpu.memory_space<vmem>>, vector<15x16xf32>,
    %c15 = arith.constant 15 : index
    %c32_12 = arith.constant 32 : index
    %12 = vector.load %arg9[%c15, %c32_12] : memref<32x49xf32, #tpu.memory_space<vmem>>, vector<1x16xf32>
    tpu.vector_store %arg9[%c15, %c32_12], %3 {strides = array<i32>} : memref<32x49xf32, #tpu.memory_space<vmem>>, vector<1x16xf32>,
    %c16_13 = arith.constant 16 : index
    %c0_14 = arith.constant 0 : index
    %13 = vector.load %arg9[%c16_13, %c0_14] : memref<32x49xf32, #tpu.memory_space<vmem>>, vector<1x16xf32>
    tpu.vector_store %arg9[%c16_13, %c0_14], %3 {strides = array<i32>} : memref<32x49xf32, #tpu.memory_space<vmem>>, vector<1x16xf32>,
    %14 = vector.extract_strided_slice %0 {offsets = [16, 0], sizes = [15, 16], strides = [1, 1]} : vector<32x16xf32> to vector<15x16xf32>
    %c17 = arith.constant 17 : index
    %c0_15 = arith.constant 0 : index
    %15 = vector.load %arg9[%c17, %c0_15] : memref<32x49xf32, #tpu.memory_space<vmem>>, vector<15x16xf32>
    tpu.vector_store %arg9[%c17, %c0_15], %14 {strides = array<i32>} : memref<32x49xf32, #tpu.memory_space<vmem>>, vector<15x16xf32>,
    %16 = vector.extract_strided_slice %0 {offsets = [17, 0], sizes = [15, 16], strides = [1, 1]} : vector<32x16xf32> to vector<15x16xf32>
    %c16_16 = arith.constant 16 : index
    %c32_17 = arith.constant 32 : index
    %17 = vector.load %arg9[%c16_16, %c32_17] : memref<32x49xf32, #tpu.memory_space<vmem>>, vector<15x16xf32>
    tpu.vector_store %arg9[%c16_16, %c32_17], %16 {strides = array<i32>} : memref<32x49xf32, #tpu.memory_space<vmem>>, vector<15x16xf32>,
    %c31 = arith.constant 31 : index
    %c32_18 = arith.constant 32 : index
    %18 = vector.load %arg9[%c31, %c32_18] : memref<32x49xf32, #tpu.memory_space<vmem>>, vector<1x16xf32>
    tpu.vector_store %arg9[%c31, %c32_18], %3 {strides = array<i32>} : memref<32x49xf32, #tpu.memory_space<vmem>>, vector<1x16xf32>,
    %c0_19 = arith.constant 0 : index
    %c0_20 = arith.constant 0 : index
    %19 = vector.load %arg9[%c0_19, %c0_20] : memref<32x49xf32, #tpu.memory_space<vmem>>, vector<32x49xf32>
    %cst_21 = arith.constant dense<0.000000e+00> : vector<32x32xf32>
    %20 = tpu.matmul %19, %1, %cst_21 {dimension_numbers = #tpu.dot_dimension_numbers<[1], [0], [0], [1], [0, 0, 1, 1], [], []>} : vector<32x49xf32>, vector<49x32xf32>, vector<32x32xf32> -> vector<32x32xf32>
    %21 = vector.extract_strided_slice %20 {offsets = [0, 0], sizes = [32, 16], strides = [1, 1]} : vector<32x32xf32> to vector<32x16xf32>
    %22 = vector.extract_strided_slice %20 {offsets = [0, 16], sizes = [32, 16], strides = [1, 1]} : vector<32x32xf32> to vector<32x16xf32>
    %23 = arith.maximumf %21, %22 : vector<32x16xf32>
    %cst_22 = arith.constant dense<0.000000e+00> : vector<32x16xf32>
    %24 = tpu.matmul %2, %23, %cst_22 {dimension_numbers = #tpu.dot_dimension_numbers<[1], [0], [0], [1], [0, 0, 1, 1], [], []>} : vector<32x32xf32>, vector<32x16xf32>, vector<32x16xf32> -> vector<32x16xf32>
    %25 = vector.extract_strided_slice %24 {offsets = [0, 0], sizes = [16, 16], strides = [1, 1]} : vector<32x16xf32> to vector<16x16xf32>
    %26 = vector.extract_strided_slice %24 {offsets = [16, 0], sizes = [16, 16], strides = [1, 1]} : vector<32x16xf32> to vector<16x16xf32>
    %27 = arith.maximumf %25, %26 : vector<16x16xf32>
    %cst_23 = arith.constant 0.000000e+00 : f32
    %28 = vector.broadcast %cst_23 : f32 to vector<16x16xf32>
    %29 = arith.maximumf %27, %28 : vector<16x16xf32>
    %c0_24 = arith.constant 0 : index
    %c0_25 = arith.constant 0 : index
    %30 = vector.load %arg3[%c0_24, %c0_25] : memref<49x32xf32, #tpu.memory_space<vmem>>, vector<49x32xf32>
    %c0_26 = arith.constant 0 : index
    %c0_27 = arith.constant 0 : index
    %31 = vector.load %arg6[%c0_26, %c0_27] : memref<16x16xf32, #tpu.memory_space<vmem>>, vector<16x16xf32>
    %cst_28 = arith.constant 0.000000e+00 : f32
    %32 = vector.broadcast %cst_28 : f32 to vector<1x16xf32>
    %c0_29 = arith.constant 0 : index
    %c16_30 = arith.constant 16 : index
    %33 = vector.load %arg10[%c0_29, %c16_30] : memref<16x49xf32, #tpu.memory_space<vmem>>, vector<16x16xf32>
    tpu.vector_store %arg10[%c0_29, %c16_30], %29 {strides = array<i32>} : memref<16x49xf32, #tpu.memory_space<vmem>>, vector<16x16xf32>,
    %cst_31 = arith.constant 1.000000e+00 : f32
    %34 = vector.broadcast %cst_31 : f32 to vector<16x1xf32>
    %c0_32 = arith.constant 0 : index
    %c48_33 = arith.constant 48 : index
    %35 = vector.load %arg10[%c0_32, %c48_33] : memref<16x49xf32, #tpu.memory_space<vmem>>, vector<16x1xf32>
    tpu.vector_store %arg10[%c0_32, %c48_33], %34 {strides = array<i32>} : memref<16x49xf32, #tpu.memory_space<vmem>>, vector<16x1xf32>,
    %c0_34 = arith.constant 0 : index
    %c0_35 = arith.constant 0 : index
    %36 = vector.load %arg10[%c0_34, %c0_35] : memref<16x49xf32, #tpu.memory_space<vmem>>, vector<1x16xf32>
    tpu.vector_store %arg10[%c0_34, %c0_35], %32 {strides = array<i32>} : memref<16x49xf32, #tpu.memory_space<vmem>>, vector<1x16xf32>,
    %37 = vector.extract_strided_slice %29 {offsets = [0, 0], sizes = [7, 16], strides = [1, 1]} : vector<16x16xf32> to vector<7x16xf32>
    %c1_36 = arith.constant 1 : index
    %c0_37 = arith.constant 0 : index
    %38 = vector.load %arg10[%c1_36, %c0_37] : memref<16x49xf32, #tpu.memory_space<vmem>>, vector<7x16xf32>
    tpu.vector_store %arg10[%c1_36, %c0_37], %37 {strides = array<i32>} : memref<16x49xf32, #tpu.memory_space<vmem>>, vector<7x16xf32>,
    %39 = vector.extract_strided_slice %29 {offsets = [1, 0], sizes = [7, 16], strides = [1, 1]} : vector<16x16xf32> to vector<7x16xf32>
    %c0_38 = arith.constant 0 : index
    %c32_39 = arith.constant 32 : index
    %40 = vector.load %arg10[%c0_38, %c32_39] : memref<16x49xf32, #tpu.memory_space<vmem>>, vector<7x16xf32>
    tpu.vector_store %arg10[%c0_38, %c32_39], %39 {strides = array<i32>} : memref<16x49xf32, #tpu.memory_space<vmem>>, vector<7x16xf32>,
    %c7 = arith.constant 7 : index
    %c32_40 = arith.constant 32 : index
    %41 = vector.load %arg10[%c7, %c32_40] : memref<16x49xf32, #tpu.memory_space<vmem>>, vector<1x16xf32>
    tpu.vector_store %arg10[%c7, %c32_40], %32 {strides = array<i32>} : memref<16x49xf32, #tpu.memory_space<vmem>>, vector<1x16xf32>,
    %c8 = arith.constant 8 : index
    %c0_41 = arith.constant 0 : index
    %42 = vector.load %arg10[%c8, %c0_41] : memref<16x49xf32, #tpu.memory_space<vmem>>, vector<1x16xf32>
    tpu.vector_store %arg10[%c8, %c0_41], %32 {strides = array<i32>} : memref<16x49xf32, #tpu.memory_space<vmem>>, vector<1x16xf32>,
    %43 = vector.extract_strided_slice %29 {offsets = [8, 0], sizes = [7, 16], strides = [1, 1]} : vector<16x16xf32> to vector<7x16xf32>
    %c9 = arith.constant 9 : index
    %c0_42 = arith.constant 0 : index
    %44 = vector.load %arg10[%c9, %c0_42] : memref<16x49xf32, #tpu.memory_space<vmem>>, vector<7x16xf32>
    tpu.vector_store %arg10[%c9, %c0_42], %43 {strides = array<i32>} : memref<16x49xf32, #tpu.memory_space<vmem>>, vector<7x16xf32>,
    %45 = vector.extract_strided_slice %29 {offsets = [9, 0], sizes = [7, 16], strides = [1, 1]} : vector<16x16xf32> to vector<7x16xf32>
    %c8_43 = arith.constant 8 : index
    %c32_44 = arith.constant 32 : index
    %46 = vector.load %arg10[%c8_43, %c32_44] : memref<16x49xf32, #tpu.memory_space<vmem>>, vector<7x16xf32>
    tpu.vector_store %arg10[%c8_43, %c32_44], %45 {strides = array<i32>} : memref<16x49xf32, #tpu.memory_space<vmem>>, vector<7x16xf32>,
    %c15_45 = arith.constant 15 : index
    %c32_46 = arith.constant 32 : index
    %47 = vector.load %arg10[%c15_45, %c32_46] : memref<16x49xf32, #tpu.memory_space<vmem>>, vector<1x16xf32>
    tpu.vector_store %arg10[%c15_45, %c32_46], %32 {strides = array<i32>} : memref<16x49xf32, #tpu.memory_space<vmem>>, vector<1x16xf32>,
    %c0_47 = arith.constant 0 : index
    %c0_48 = arith.constant 0 : index
    %48 = vector.load %arg10[%c0_47, %c0_48] : memref<16x49xf32, #tpu.memory_space<vmem>>, vector<16x49xf32>
    %cst_49 = arith.constant dense<0.000000e+00> : vector<16x32xf32>
    %49 = tpu.matmul %48, %30, %cst_49 {dimension_numbers = #tpu.dot_dimension_numbers<[1], [0], [0], [1], [0, 0, 1, 1], [], []>} : vector<16x49xf32>, vector<49x32xf32>, vector<16x32xf32> -> vector<16x32xf32>
    %50 = vector.extract_strided_slice %49 {offsets = [0, 0], sizes = [16, 16], strides = [1, 1]} : vector<16x32xf32> to vector<16x16xf32>
    %51 = vector.extract_strided_slice %49 {offsets = [0, 16], sizes = [16, 16], strides = [1, 1]} : vector<16x32xf32> to vector<16x16xf32>
    %52 = arith.maximumf %50, %51 : vector<16x16xf32>
    %cst_50 = arith.constant dense<0.000000e+00> : vector<16x16xf32>
    %53 = tpu.matmul %31, %52, %cst_50 {dimension_numbers = #tpu.dot_dimension_numbers<[1], [0], [0], [1], [0, 0, 1, 1], [], []>} : vector<16x16xf32>, vector<16x16xf32>, vector<16x16xf32> -> vector<16x16xf32>
    %54 = vector.extract_strided_slice %53 {offsets = [0, 0], sizes = [8, 16], strides = [1, 1]} : vector<16x16xf32> to vector<8x16xf32>
    %55 = vector.extract_strided_slice %53 {offsets = [8, 0], sizes = [8, 16], strides = [1, 1]} : vector<16x16xf32> to vector<8x16xf32>
    %56 = arith.maximumf %54, %55 : vector<8x16xf32>
    %cst_51 = arith.constant 0.000000e+00 : f32
    %57 = vector.broadcast %cst_51 : f32 to vector<8x16xf32>
    %58 = arith.maximumf %56, %57 : vector<8x16xf32>
    %c0_52 = arith.constant 0 : index
    %c0_53 = arith.constant 0 : index
    %59 = vector.load %arg4[%c0_52, %c0_53] : memref<49x32xf32, #tpu.memory_space<vmem>>, vector<49x32xf32>
    %c0_54 = arith.constant 0 : index
    %c0_55 = arith.constant 0 : index
    %60 = vector.load %arg7[%c0_54, %c0_55] : memref<8x8xf32, #tpu.memory_space<vmem>>, vector<8x8xf32>
    %cst_56 = arith.constant 0.000000e+00 : f32
    %61 = vector.broadcast %cst_56 : f32 to vector<1x16xf32>
    %c0_57 = arith.constant 0 : index
    %c16_58 = arith.constant 16 : index
    %62 = vector.load %arg11[%c0_57, %c16_58] : memref<8x49xf32, #tpu.memory_space<vmem>>, vector<8x16xf32>
    tpu.vector_store %arg11[%c0_57, %c16_58], %58 {strides = array<i32>} : memref<8x49xf32, #tpu.memory_space<vmem>>, vector<8x16xf32>,
    %cst_59 = arith.constant 1.000000e+00 : f32
    %63 = vector.broadcast %cst_59 : f32 to vector<8x1xf32>
    %c0_60 = arith.constant 0 : index
    %c48_61 = arith.constant 48 : index
    %64 = vector.load %arg11[%c0_60, %c48_61] : memref<8x49xf32, #tpu.memory_space<vmem>>, vector<8x1xf32>
    tpu.vector_store %arg11[%c0_60, %c48_61], %63 {strides = array<i32>} : memref<8x49xf32, #tpu.memory_space<vmem>>, vector<8x1xf32>,
    %c0_62 = arith.constant 0 : index
    %c0_63 = arith.constant 0 : index
    %65 = vector.load %arg11[%c0_62, %c0_63] : memref<8x49xf32, #tpu.memory_space<vmem>>, vector<1x16xf32>
    tpu.vector_store %arg11[%c0_62, %c0_63], %61 {strides = array<i32>} : memref<8x49xf32, #tpu.memory_space<vmem>>, vector<1x16xf32>,
    %66 = vector.extract_strided_slice %58 {offsets = [0, 0], sizes = [3, 16], strides = [1, 1]} : vector<8x16xf32> to vector<3x16xf32>
    %c1_64 = arith.constant 1 : index
    %c0_65 = arith.constant 0 : index
    %67 = vector.load %arg11[%c1_64, %c0_65] : memref<8x49xf32, #tpu.memory_space<vmem>>, vector<3x16xf32>
    tpu.vector_store %arg11[%c1_64, %c0_65], %66 {strides = array<i32>} : memref<8x49xf32, #tpu.memory_space<vmem>>, vector<3x16xf32>,
    %68 = vector.extract_strided_slice %58 {offsets = [1, 0], sizes = [3, 16], strides = [1, 1]} : vector<8x16xf32> to vector<3x16xf32>
    %c0_66 = arith.constant 0 : index
    %c32_67 = arith.constant 32 : index
    %69 = vector.load %arg11[%c0_66, %c32_67] : memref<8x49xf32, #tpu.memory_space<vmem>>, vector<3x16xf32>
    tpu.vector_store %arg11[%c0_66, %c32_67], %68 {strides = array<i32>} : memref<8x49xf32, #tpu.memory_space<vmem>>, vector<3x16xf32>,
    %c3 = arith.constant 3 : index
    %c32_68 = arith.constant 32 : index
    %70 = vector.load %arg11[%c3, %c32_68] : memref<8x49xf32, #tpu.memory_space<vmem>>, vector<1x16xf32>
    tpu.vector_store %arg11[%c3, %c32_68], %61 {strides = array<i32>} : memref<8x49xf32, #tpu.memory_space<vmem>>, vector<1x16xf32>,
    %c4 = arith.constant 4 : index
    %c0_69 = arith.constant 0 : index
    %71 = vector.load %arg11[%c4, %c0_69] : memref<8x49xf32, #tpu.memory_space<vmem>>, vector<1x16xf32>
    tpu.vector_store %arg11[%c4, %c0_69], %61 {strides = array<i32>} : memref<8x49xf32, #tpu.memory_space<vmem>>, vector<1x16xf32>,
    %72 = vector.extract_strided_slice %58 {offsets = [4, 0], sizes = [3, 16], strides = [1, 1]} : vector<8x16xf32> to vector<3x16xf32>
    %c5 = arith.constant 5 : index
    %c0_70 = arith.constant 0 : index
    %73 = vector.load %arg11[%c5, %c0_70] : memref<8x49xf32, #tpu.memory_space<vmem>>, vector<3x16xf32>
    tpu.vector_store %arg11[%c5, %c0_70], %72 {strides = array<i32>} : memref<8x49xf32, #tpu.memory_space<vmem>>, vector<3x16xf32>,
    %74 = vector.extract_strided_slice %58 {offsets = [5, 0], sizes = [3, 16], strides = [1, 1]} : vector<8x16xf32> to vector<3x16xf32>
    %c4_71 = arith.constant 4 : index
    %c32_72 = arith.constant 32 : index
    %75 = vector.load %arg11[%c4_71, %c32_72] : memref<8x49xf32, #tpu.memory_space<vmem>>, vector<3x16xf32>
    tpu.vector_store %arg11[%c4_71, %c32_72], %74 {strides = array<i32>} : memref<8x49xf32, #tpu.memory_space<vmem>>, vector<3x16xf32>,
    %c7_73 = arith.constant 7 : index
    %c32_74 = arith.constant 32 : index
    %76 = vector.load %arg11[%c7_73, %c32_74] : memref<8x49xf32, #tpu.memory_space<vmem>>, vector<1x16xf32>
    tpu.vector_store %arg11[%c7_73, %c32_74], %61 {strides = array<i32>} : memref<8x49xf32, #tpu.memory_space<vmem>>, vector<1x16xf32>,
    %c0_75 = arith.constant 0 : index
    %c0_76 = arith.constant 0 : index
    %77 = vector.load %arg11[%c0_75, %c0_76] : memref<8x49xf32, #tpu.memory_space<vmem>>, vector<8x49xf32>
    %cst_77 = arith.constant dense<0.000000e+00> : vector<8x32xf32>
    %78 = tpu.matmul %77, %59, %cst_77 {dimension_numbers = #tpu.dot_dimension_numbers<[1], [0], [0], [1], [0, 0, 1, 1], [], []>} : vector<8x49xf32>, vector<49x32xf32>, vector<8x32xf32> -> vector<8x32xf32>
    %79 = vector.extract_strided_slice %78 {offsets = [0, 0], sizes = [8, 16], strides = [1, 1]} : vector<8x32xf32> to vector<8x16xf32>
    %80 = vector.extract_strided_slice %78 {offsets = [0, 16], sizes = [8, 16], strides = [1, 1]} : vector<8x32xf32> to vector<8x16xf32>
    %81 = arith.maximumf %79, %80 : vector<8x16xf32>
    %cst_78 = arith.constant dense<0.000000e+00> : vector<8x16xf32>
    %82 = tpu.matmul %60, %81, %cst_78 {dimension_numbers = #tpu.dot_dimension_numbers<[1], [0], [0], [1], [0, 0, 1, 1], [], []>} : vector<8x8xf32>, vector<8x16xf32>, vector<8x16xf32> -> vector<8x16xf32>
    %83 = vector.extract_strided_slice %82 {offsets = [0, 0], sizes = [4, 16], strides = [1, 1]} : vector<8x16xf32> to vector<4x16xf32>
    %84 = vector.extract_strided_slice %82 {offsets = [4, 0], sizes = [4, 16], strides = [1, 1]} : vector<8x16xf32> to vector<4x16xf32>
    %85 = arith.maximumf %83, %84 : vector<4x16xf32>
    %cst_79 = arith.constant 0.000000e+00 : f32
    %86 = vector.broadcast %cst_79 : f32 to vector<4x16xf32>
    %87 = arith.maximumf %85, %86 : vector<4x16xf32>
    %c0_80 = arith.constant 0 : index
    %c0_81 = arith.constant 0 : index
    %88 = vector.load %arg8[%c0_80, %c0_81] : memref<4x16xf32, #tpu.memory_space<vmem>>, vector<4x16xf32>
    tpu.vector_store %arg8[%c0_80, %c0_81], %87 {strides = array<i32>} : memref<4x16xf32, #tpu.memory_space<vmem>>, vector<4x16xf32>,
    return
  }
  func.func @transform_0(%arg0: i32) -> (i32, i32) {
    %c0_i32 = arith.constant 0 : i32
    %c0_i32_0 = arith.constant 0 : i32
    return %arg0, %c0_i32 : i32, i32
  }
  func.func @transform_1(%arg0: i32) -> (i32, i32) {
    %c0_i32 = arith.constant 0 : i32
    %c0_i32_0 = arith.constant 0 : i32
    %c0_i32_1 = arith.constant 0 : i32
    return %c0_i32, %c0_i32_0 : i32, i32
  }
  func.func @transform_2(%arg0: i32) -> (i32, i32) {
    %c0_i32 = arith.constant 0 : i32
    %c0_i32_0 = arith.constant 0 : i32
    %c0_i32_1 = arith.constant 0 : i32
    return %c0_i32, %c0_i32_0 : i32, i32
  }
  func.func @transform_3(%arg0: i32) -> (i32, i32) {
    %c0_i32 = arith.constant 0 : i32
    %c0_i32_0 = arith.constant 0 : i32
    %c0_i32_1 = arith.constant 0 : i32
    return %c0_i32, %c0_i32_0 : i32, i32
  }
  func.func @transform_4(%arg0: i32) -> (i32, i32) {
    %c0_i32 = arith.constant 0 : i32
    %c0_i32_0 = arith.constant 0 : i32
    %c0_i32_1 = arith.constant 0 : i32
    return %c0_i32, %c0_i32_0 : i32, i32
  }
  func.func @transform_5(%arg0: i32) -> (i32, i32) {
    %c0_i32 = arith.constant 0 : i32
    %c0_i32_0 = arith.constant 0 : i32
    %c0_i32_1 = arith.constant 0 : i32
    return %c0_i32, %c0_i32_0 : i32, i32
  }
  func.func @transform_6(%arg0: i32) -> (i32, i32) {
    %c0_i32 = arith.constant 0 : i32
    %c0_i32_0 = arith.constant 0 : i32
    %c0_i32_1 = arith.constant 0 : i32
    return %c0_i32, %c0_i32_0 : i32, i32
  }
  func.func @transform_7(%arg0: i32) -> (i32, i32) {
    %c0_i32 = arith.constant 0 : i32
    %c0_i32_0 = arith.constant 0 : i32
    return %arg0, %c0_i32 : i32, i32
  }
}

</mosaic_0001>

<bundles_post_ra>
// kernel: encoder_forward.1
= control target key start
LH: loop header
LB: loop body
LE: loop exit
PB: predicated region body
PF: predicated region fallthrough
CT: control target
= control target key end

     0   :  { %vm114_vm0 = vcmask 1040384   ;;  %s880_s26 = smov 32   ;;  %s881_s27 = smov 16   ;;  %v882_v11 = vmov 0.0   ;;  %vm57_vm1 = vcmask 261248   ;;  %vm62_vm2 = vcmask 400768   ;;  %s1131_s0 = inlined_call_operand.vmem [shape: f32[32,16], index: 0, kind: input, shape index: {}]   ;;  %s1132_s1 = inlined_call_operand.vmem [shape: f32[49,32], index: 1, kind: input, shape index: {}]   ;;  %s1133_s4 = inlined_call_operand.vmem [shape: f32[32,32], index: 4, kind: input, shape index: {}]   ;;  %s1134_s2 = inlined_call_operand.vmem [shape: f32[49,32], index: 2, kind: input, shape index: {}]   ;;  %s1135_s5 = inlined_call_operand.vmem [shape: f32[16,16], index: 5, kind: input, shape index: {}]   ;;  %s1136_s3 = inlined_call_operand.vmem [shape: f32[49,32], index: 3, kind: input, shape index: {}]   ;;  %s1137_s6 = inlined_call_operand.vmem [shape: f32[8,8], index: 6, kind: input, shape index: {}]   ;;  %s1138_s7 = inlined_call_operand.vmem [shape: f32[4,16], index: 7, kind: output, shape index: {}]  }
   0x1   :  { %v26_v0 = vld [vmem:[%s1131_s0] sm:$0xff]  ;;  %v36_v1 = vld [vmem:[%s1132_s1 + $0x30] sm:$0x1]  ;;  %v27_v2 = vld [vmem:[%s1131_s0 + $0x8] sm:$0xff]  ;;  %vm67_vm3 = vcmask 122880   ;;  %v883_v14 = vmov 1.0  }
   0x2   :  { %73 = vrot.lane.b32.xlu1 %v26_v0, %s880_s26  ;;  %45 = vrot.lane.b32.xlu0 %v26_v0, %s881_s27  ;;  %v35_v3 = vld [vmem:[%s1132_s1 + $0x28] sm:$0xff]  ;;  %v34_v4 = vld [vmem:[%s1132_s1 + $0x20] sm:$0xff]  ;;  %vm69_vm4 = vcmask 130048   ;;  %vm71_vm5 = vcmask 129024   ;;  %vm83_vm6 = vcmask 385280   ;;  %vm81_vm7 = vcmask 392448  }
   0x3   :  { %794 = vmatprep.subr.msk.mxu0 %vm114_vm0, %v36_v1  ;;  %v29_v5 = vld [vmem:[%s1131_s0 + $0x18] sm:$0xff]  ;;  %v28_v6 = vld [vmem:[%s1131_s0 + $0x10] sm:$0xff]  ;;  %v31_v9 = vld [vmem:[%s1132_s1 + $0x8] sm:$0xff]  ;;  %vm79_vm8 = vcmask 392449   ;;  %vm101_vm9 = vcmask 400384   ;;  %vm223_vm10 = vcmask 261120  }
   0x4   :  { %795 = vmatpush3.msk.msra.mxu0 %vm114_vm0, %v36_v1  ;;  %v33_v7 = vld [vmem:[%s1132_s1 + $0x18] sm:$0xff]  ;;  %v32_v8 = vld [vmem:[%s1132_s1 + $0x10] sm:$0xff]  ;;  %v30_v10 = vld [vmem:[%s1132_s1] sm:$0xff]  ;;  %s884_s25 = smov 112   ;;  %vm885_vm11 = vmmov 0   ;;  %vm554_vm12 = vcmask 124928  }
   0x5   :  { %796 = vmatprep.subr.mxu0 %v35_v3  ;;  %v37_v26 = vld [vmem:[%s1133_s4] sm:$0xff]  ;;  %v38_v38 = vld [vmem:[%s1133_s4 + $0x8] sm:$0xff]  ;;  %v39_v39 = vld [vmem:[%s1133_s4 + $0x10] sm:$0xff]  ;;  %vm563_vm13 = vcmask 129028   ;;  %vm559_vm14 = vcmask 388353   ;;  %vm565_vm15 = vcmask 392453  }
   0x6   :  { %75 = vrot.lane.b32.xlu1 %v27_v2, %s880_s26  ;;  %47 = vrot.lane.b32.xlu0 %v27_v2, %s881_s27  ;;  %v40_v40 = vld [vmem:[%s1133_s4 + $0x18] sm:$0xff]  ;;  %v331_v41 = vld [vmem:[%s1134_s2 + $0x30] sm:$0x1] }
   0x7   :  { %797 = vmatpush3.msra.mxu0 %v35_v3  ;;  %822 = vmatprep.mubr.msk.f32.mxu1 %vm223_vm10, %v37_v26  ;;  %v330_v42 = vld [vmem:[%s1134_s2 + $0x28] sm:$0xff]  ;;  %v329_v44 = vld [vmem:[%s1134_s2 + $0x20] sm:$0xff]  ;;  %v328_v46 = vld [vmem:[%s1134_s2 + $0x18] sm:$0xff] }
   0x8   :  { %798 = vmatprep.subr.mxu0 %v34_v4  ;;  %v327_v47 = vld [vmem:[%s1134_s2 + $0x10] sm:$0xff]  ;;  %v326_v49 = vld [vmem:[%s1134_s2 + $0x8] sm:$0xff]  ;;  %v325_v52 = vld [vmem:[%s1134_s2] sm:$0xff] }
   0x9   :  { %799 = vmatpush3.msra.mxu0 %v34_v4  ;;  %v332_v62 = vld [vmem:[%s1135_s5] sm:$0xff] }
   0xa   :  { %51 = vrot.lane.b32.xlu1 %v29_v5, %s881_s27  ;;  %49 = vrot.lane.b32.xlu0 %v28_v6, %s881_s27 }
   0xb   :  { %800 = vmatprep.subr.mxu0 %v33_v7 }
   0xc   :  { %801 = vmatpush3.msra.mxu0 %v33_v7  ;;  %v544_v7 = vld [vmem:[%s1136_s3 + $0x28] sm:$0xff] }
   0xd   :  { %802 = vmatprep.subr.mxu0 %v32_v8 }
   0xe   :  { %90 = vrot.lane.b32.xlu1 %v29_v5, %s880_s26  ;;  %88 = vrot.lane.b32.xlu0 %v28_v6, %s880_s26 }
   0xf   :  { %803 = vmatpush3.msra.mxu0 %v32_v8  ;;  %v543_v8 = vld [vmem:[%s1136_s3 + $0x20] sm:$0xff] }
  0x10   :  { %804 = vmatprep.subr.mxu0 %v31_v9 }
  0x11   :  { %805 = vmatpush3.msra.mxu0 %v31_v9  ;;  %v542_v9 = vld [vmem:[%s1136_s3 + $0x18] sm:$0xff] }
  0x12   :  { %806 = vmatprep.subr.mxu0 %v30_v10 }
  0x13   :  { %807 = vmatpush3.msra.mxu0 %v30_v10  ;;  %v541_v10 = vld [vmem:[%s1136_s3 + $0x10] sm:$0xff] }
  0x14   :  { %852 = vmatprep.subr.mxu0 %v882_v11 }
  0x74   :  { %v74_v12 = vpop.permute.xlu1 %73  ;;  %v46_v13 = vpop.permute.xlu0 %45 }
  0x75   :  { %58 = vst.msk [vmem:[#allocation2] sm:$0xff] %vm57_vm1, %v46_v13 }
  0x76   :  { %63 = vst.msk [vmem:[#allocation2] sm:$0xff] %vm62_vm2, %v883_v14 }
  0x77   :  { %68 = vst.msk [vmem:[#allocation2] sm:$0x1] %vm67_vm3, %v882_v11 }
  0x78   :  { %v76_v15 = vpop.permute.xlu1 %75  ;;  %v48_v16 = vpop.permute.xlu0 %47 }
  0x79   :  { %59 = vst.msk [vmem:[#allocation2 + $0x8] sm:$0xff] %vm57_vm1, %v48_v16 }
  0x7a   :  { %64 = vst.msk [vmem:[#allocation2 + $0x8] sm:$0xff] %vm62_vm2, %v883_v14 }
  0x7b   :  { %70 = vst.msk [vmem:[#allocation2 + $0x1] sm:$0xff] %vm69_vm4, %v26_v0 }
  0x7c   :  { %72 = vst.msk [vmem:[#allocation2 + $0x9] sm:$0x7f] %vm71_vm5, %v27_v2  ;;  %v52_v17 = vpop.permute.xlu1 %51  ;;  %v50_v18 = vpop.permute.xlu0 %49 }
  0x7d   :  { %84 = vst.msk [vmem:[#allocation2 + $0xf] sm:$0x1] %vm83_vm6, %v882_v11 }
  0x7e   :  { %82 = vst.msk [vmem:[#allocation2 + $0x7] sm:$0xff] %vm81_vm7, %v76_v15  ;;  %v539_v15 = vld [vmem:[%s1136_s3] sm:$0xff] }
  0x7f   :  { %80 = vst.msk [vmem:[#allocation2 - $0x1] sm:$0xfe] %vm79_vm8, %v74_v12  ;;  %v540_v12 = vld [vmem:[%s1136_s3 + $0x8] sm:$0xff] }
  0x80   :  { %61 = vst.msk [vmem:[#allocation2 + $0x18] sm:$0xff] %vm57_vm1, %v52_v17  ;;  %60 = vst.msk [vmem:[#allocation2 + $0x10] sm:$0xff] %vm57_vm1, %v50_v18  ;;  %v91_v19 = vpop.permute.xlu1 %90  ;;  %v89_v20 = vpop.permute.xlu0 %88 }
  0x81   :  { %66 = vst.msk [vmem:[#allocation2 + $0x18] sm:$0xff] %vm62_vm2, %v883_v14  ;;  %65 = vst.msk [vmem:[#allocation2 + $0x10] sm:$0xff] %vm62_vm2, %v883_v14 }
  0x82   :  { %87 = vst.msk [vmem:[#allocation2 + $0x19] sm:$0x7f] %vm71_vm5, %v29_v5  ;;  %v333_v5 = vld [vmem:[%s1135_s5 + $0x8] sm:$0xff] }
  0x83   :  { %85 = vst.msk [vmem:[#allocation2 + $0x10] sm:$0x1] %vm67_vm3, %v882_v11 }
  0x84   :  { %86 = vst.msk [vmem:[#allocation2 + $0x11] sm:$0xff] %vm69_vm4, %v28_v6  ;;  %v545_v6 = vld [vmem:[%s1136_s3 + $0x30] sm:$0x1] }
  0x85   :  { %96 = vst.msk [vmem:[#allocation2 + $0x1f] sm:$0x1] %vm83_vm6, %v882_v11  ;;  %v98_v22 = vld [vmem:[#allocation2 + $0x8] sm:$0xff] }
  0x86   :  { %95 = vst.msk [vmem:[#allocation2 + $0x17] sm:$0xff] %vm81_vm7, %v91_v19  ;;  %v97_v21 = vld [vmem:[#allocation2] sm:$0xff] }
  0x87   :  { %94 = vst.msk [vmem:[#allocation2 + $0xf] sm:$0xfe] %vm79_vm8, %v89_v20  ;;  %808 = vmatprep.mubr.msk.f32.mxu0 %vm101_vm9, %v97_v21 }
  0x88   :  { %809 = vmatmul.mubr.msk.f32.vlgmr.msra.gmra.mxu0 %vm101_vm9, %v98_v22 }
  0x89   :  { %853 = vmatpush3.msk.msra.mxu0 %vm114_vm0, %v545_v6 }
  0x8a   :  { %854 = vmatprep.subr.mxu0 %v882_v11 }
  0x8b   :  { %855 = vmatpush3.msra.mxu0 %v544_v7 }
  0x8c   :  { %856 = vmatprep.subr.mxu0 %v882_v11 }
  0x8d   :  { %v100_v24 = vld [vmem:[#allocation2 + $0x18] sm:$0xff]  ;;  %857 = vmatpush3.msra.mxu0 %v543_v8 }
  0x8e   :  { %v99_v23 = vld [vmem:[#allocation2 + $0x10] sm:$0xff]  ;;  %858 = vmatprep.subr.mxu0 %v882_v11 }
  0x8f   :  { %811 = vmatprep.mubr.msk.f32.mxu0 %vm101_vm9, %v99_v23  ;;  %859 = vmatpush3.msra.mxu0 %v542_v9 }
  0x90   :  { %812 = vmatmul.mubr.msk.f32.gmra.mxu0 %vm101_vm9, %v100_v24  ;;  %860 = vmatprep.subr.mxu0 %v882_v11 }
  0x91   :  { %866 = vmatprep.mubr.msk.f32.mxu0 %vm885_vm11, %v882_v11  ;;  %861 = vmatpush3.msra.mxu0 %v541_v10 }
  0x92   :  { %862 = vmatprep.subr.mxu0 %v882_v11 }
  0x93   :  { %863 = vmatpush3.msra.mxu0 %v540_v12 }
  0x94   :  { %864 = vmatprep.subr.mxu0 %v882_v11 }
  0x95   :  { %865 = vmatpush3.msra.mxu0 %v539_v15 }
 0x148   :  { %v810_v25 = vpop.f32.mrf.mxu0 }
 0x14a   :  { %v184_v27 = vpop.f32.mrf.mxu0 }
 0x150   :  { %v813_v28 = vpop.f32.mrf.mxu0 }
 0x151   :  { %213 = vrot.lane.b32.xlu0 %v813_v28, %s884_s25 }
 0x152   :  { %v194_v29 = vpop.f32.mrf.mxu0 }
 0x153   :  { %211 = vrot.lane.b32.xlu1 %v194_v29, %s884_s25 }
 0x155   :  { %209 = vrot.lane.b32.xlu0 %v810_v25, %s884_s25 }
 0x157   :  { %207 = vrot.lane.b32.xlu1 %v184_v27, %s884_s25 }
 0x1c3   :  { %v214_v30 = vpop.permute.xlu0 %213 }
 0x1c4   :  { %v222_v31 = vmax.f32 %v813_v28, %v214_v30 }
 0x1c5   :  { %v212_v32 = vpop.permute.xlu1 %211 }
 0x1c6   :  { %v221_v33 = vmax.f32 %v194_v29, %v212_v32  ;;  %814 = vmatprep.subr.mxu1 %v222_v31 }
 0x1c7   :  { %815 = vmatpush3.msra.mxu1 %v222_v31  ;;  %v210_v34 = vpop.permute.xlu0 %209 }
 0x1c8   :  { %v220_v35 = vmax.f32 %v810_v25, %v210_v34  ;;  %816 = vmatprep.subr.mxu1 %v221_v33  ;;  %v546_v25 = vld [vmem:[%s1137_s6] sm:$0xff] }
 0x1c9   :  { %817 = vmatpush3.msra.mxu1 %v221_v33  ;;  %v208_v36 = vpop.permute.xlu1 %207 }
 0x1ca   :  { %v219_v37 = vmax.f32 %v184_v27, %v208_v36  ;;  %818 = vmatprep.subr.mxu1 %v220_v35 }
 0x1cb   :  { %819 = vmatpush3.msra.mxu1 %v220_v35 }
 0x1cc   :  { %820 = vmatprep.subr.mxu1 %v219_v37 }
 0x1cd   :  { %821 = vmatpush3.msra.mxu1 %v219_v37 }
 0x1ce   :  { %823 = vmatmul.mubr.msk.f32.vlgmr.msra.gmra.mxu1 %vm223_vm10, %v38_v38  ;;  %828 = vmatprep.subr.msk.mxu1 %vm114_vm0, %v331_v41 }
 0x1cf   :  { %825 = vmatprep.mubr.msk.f32.mxu1 %vm223_vm10, %v39_v39  ;;  %829 = vmatpush3.msk.msra.mxu1 %vm114_vm0, %v331_v41  ;;  %vm650_vm0 = vcmask 64512  }
 0x1d0   :  { %830 = vmatprep.subr.mxu1 %v330_v42 }
 0x1d1   :  { %831 = vmatpush3.msra.mxu1 %v330_v42 }
 0x1d2   :  { %826 = vmatmul.mubr.msk.f32.gmra.mxu1 %vm223_vm10, %v40_v40  ;;  %832 = vmatprep.subr.mxu1 %v329_v44 }
 0x1d3   :  { %833 = vmatpush3.msra.mxu1 %v329_v44 }
 0x1d4   :  { %834 = vmatprep.subr.mxu1 %v328_v46 }
 0x1d5   :  { %835 = vmatpush3.msra.mxu1 %v328_v46 }
 0x1d6   :  { %836 = vmatprep.subr.mxu1 %v327_v47 }
 0x1d7   :  { %837 = vmatpush3.msra.mxu1 %v327_v47 }
 0x1d8   :  { %838 = vmatprep.subr.mxu1 %v326_v49 }
 0x1d9   :  { %839 = vmatpush3.msra.mxu1 %v326_v49 }
 0x1da   :  { %840 = vmatprep.subr.mxu1 %v325_v52 }
 0x1db   :  { %841 = vmatpush3.msra.mxu1 %v325_v52 }
 0x28e   :  { %v824_v43 = vpop.f32.mrf.mxu1 }
 0x290   :  { %v302_v45 = vpop.f32.mrf.mxu1 }
 0x292   :  { %v827_v48 = vpop.f32.mrf.mxu1 }
 0x293   :  { %v322_v50 = vmax.f32 %v824_v43, %v827_v48 }
 0x294   :  { %v312_v51 = vpop.f32.mrf.mxu1 }
 0x295   :  { %v324_v53 = vmax.f32 %v322_v50, 0.0  ;;  %v321_v54 = vmax.f32 %v302_v45, %v312_v51 }
 0x297   :  { %v323_v55 = vmax.f32 %v321_v54, 0.0  ;;  %338 = vrot.lane.b32.xlu1 %v324_v53, %s881_s27 }
 0x299   :  { %336 = vrot.lane.b32.xlu0 %v323_v55, %s881_s27 }
 0x29b   :  { %355 = vrot.lane.b32.xlu1 %v324_v53, %s880_s26 }
 0x29d   :  { %348 = vrot.lane.b32.xlu0 %v323_v55, %s880_s26 }
 0x309   :  { %v339_v56 = vpop.permute.xlu1 %338 }
 0x30a   :  { %343 = vst.msk [vmem:[#allocation3 + $0x8] sm:$0xff] %vm57_vm1, %v339_v56 }
 0x30b   :  { %345 = vst.msk [vmem:[#allocation3 + $0x8] sm:$0xff] %vm62_vm2, %v883_v14  ;;  %v337_v57 = vpop.permute.xlu0 %336 }
 0x30c   :  { %353 = vst.msk [vmem:[#allocation3 + $0x8] sm:$0x1] %vm67_vm3, %v882_v11 }
 0x30d   :  { %354 = vst.msk [vmem:[#allocation3 + $0x9] sm:$0x7f] %vm71_vm5, %v324_v53  ;;  %v356_v58 = vpop.permute.xlu1 %355 }
 0x30e   :  { %342 = vst.msk [vmem:[#allocation3] sm:$0xff] %vm57_vm1, %v337_v57 }
 0x30f   :  { %359 = vst.msk [vmem:[#allocation3 + $0xf] sm:$0x1] %vm83_vm6, %v882_v11  ;;  %v349_v59 = vpop.permute.xlu0 %348 }
 0x310   :  { %344 = vst.msk [vmem:[#allocation3] sm:$0xff] %vm62_vm2, %v883_v14 }
 0x311   :  { %346 = vst.msk [vmem:[#allocation3] sm:$0x1] %vm67_vm3, %v882_v11 }
 0x312   :  { %347 = vst.msk [vmem:[#allocation3 + $0x1] sm:$0x7f] %vm71_vm5, %v323_v55 }
 0x313   :  { %358 = vst.msk [vmem:[#allocation3 + $0x7] sm:$0xfe] %vm79_vm8, %v356_v58  ;;  %351 = vst.msk [vmem:[#allocation3 - $0x1] sm:$0xfe] %vm79_vm8, %v349_v59 }
 0x314   :  { %352 = vst.msk [vmem:[#allocation3 + $0x7] sm:$0x1] %vm83_vm6, %v882_v11 }
 0x31a   :  { %v361_v61 = vld [vmem:[#allocation3 + $0x8] sm:$0xff] }
 0x31b   :  { %v360_v60 = vld [vmem:[#allocation3] sm:$0xff] }
 0x31c   :  { %842 = vmatprep.mubr.msk.f32.mxu1 %vm101_vm9, %v360_v60 }
 0x31d   :  { %843 = vmatmul.mubr.msk.f32.vlgmr.msra.gmra.mxu1 %vm101_vm9, %v361_v61 }
 0x31e   :  { %849 = vmatprep.mubr.msk.f32.mxu1 %vm69_vm4, %v332_v62 }
 0x3dd   :  { %v844_v63 = vpop.f32.mrf.mxu1 }
 0x3de   :  { %450 = vrot.lane.b32.xlu0 %v844_v63, %s884_s25 }
 0x3df   :  { %v437_v0 = vpop.f32.mrf.mxu1 }
 0x3e0   :  { %448 = vrot.lane.b32.xlu1 %v437_v0, %s884_s25 }
 0x450   :  { %v451_v1 = vpop.permute.xlu0 %450 }
 0x451   :  { %v455_v2 = vmax.f32 %v844_v63, %v451_v1 }
 0x452   :  { %v449_v3 = vpop.permute.xlu1 %448 }
 0x453   :  { %v454_v4 = vmax.f32 %v437_v0, %v449_v3  ;;  %845 = vmatprep.subr.mxu1 %v455_v2 }
 0x454   :  { %846 = vmatpush3.msra.mxu1 %v455_v2 }
 0x455   :  { %847 = vmatprep.subr.mxu1 %v454_v4 }
 0x456   :  { %848 = vmatpush3.msra.mxu1 %v454_v4 }
 0x457   :  { %850 = vmatmul.mubr.msk.f32.vlgmr.msra.gmra.mxu1 %vm69_vm4, %v333_v5  ;;  %869 = vmatprep.subr.mxu1 %v882_v11 }
 0x458   :  { %871 = vmatprep.mubr.msk.f32.mxu1 %vm885_vm11, %v882_v11 }
 0x517   :  { %v851_v13 = vpop.f32.mrf.mxu1 }
 0x519   :  { %v528_v16 = vpop.f32.mrf.mxu1 }
 0x51a   :  { %v537_v17 = vmax.f32 %v528_v16, %v851_v13 }
 0x51c   :  { %v538_v18 = vmax.f32 %v537_v17, 0.0 }
 0x51e   :  { %556 = vrot.lane.b32.xlu1 %v538_v18, %s880_s26  ;;  %548 = vrot.lane.b32.xlu0 %v538_v18, %s881_s27 }
 0x590   :  { %v549_v19 = vpop.permute.xlu0 %548  ;;  %v557_v20 = vpop.permute.xlu1 %556 }
 0x591   :  { %551 = vst.msk [vmem:[#allocation4] sm:$0xff] %vm57_vm1, %v549_v19  ;;  %vm729_vm1 = vcmask 125952  }
 0x592   :  { %552 = vst.msk [vmem:[#allocation4] sm:$0xff] %vm62_vm2, %v883_v14 }
 0x593   :  { %553 = vst.msk [vmem:[#allocation4] sm:$0x1] %vm67_vm3, %v882_v11  ;;  %562 = vst.msk [vmem:[#allocation4 + $0x4] sm:$0x1] %vm67_vm3, %v882_v11 }
 0x594   :  { %555 = vst.msk [vmem:[#allocation4 + $0x1] sm:$0x7] %vm554_vm12, %v538_v18 }
 0x595   :  { %564 = vst.msk [vmem:[#allocation4 + $0x1] sm:$0x70] %vm563_vm13, %v538_v18 }
 0x596   :  { %560 = vst.msk [vmem:[#allocation4 - $0x1] sm:$0xe] %vm559_vm14, %v557_v20 }
 0x597   :  { %561 = vst.msk [vmem:[#allocation4 + $0x3] sm:$0x1] %vm83_vm6, %v882_v11  ;;  %567 = vst.msk [vmem:[#allocation4 + $0x7] sm:$0x1] %vm83_vm6, %v882_v11 }
 0x598   :  { %566 = vst.msk [vmem:[#allocation4 - $0x1] sm:$0xe0] %vm565_vm15, %v557_v20 }
 0x59f   :  { %v568_v21 = vld [vmem:[#allocation4] sm:$0xff] }
 0x5a0   :  { %867 = vmatmul.mubr.msk.f32.vlgmr.msra.gmra.mxu0 %vm101_vm9, %v568_v21 }
 0x660   :  { %v641_v14 = vpop.f32.mrf.mxu0 }
 0x661   :  { %646 = vrot.lane.b32.xlu0 %v641_v14, %s884_s25 }
 0x662   :  { %v868_v22 = vpop.f32.mrf.mxu0 }
 0x6d3   :  { %v647_v23 = vpop.permute.xlu0 %646 }
 0x6d4   :  { %v649_v24 = vmax.f32 %v641_v14, %v647_v23 }
 0x6d6   :  { %870 = vmatpush3.msra.mxu1 %v649_v24 }
 0x6d7   :  { %872 = vmatmul.mubr.msk.f32.vlgmr.msra.gmra.mxu1 %vm650_vm0, %v546_v25 }
 0x797   :  { %v720_v26 = vpop.f32.mrf.mxu1 }
 0x798   :  { %v725_v27 = vrot.slane %v720_v26, 4 }
 0x799   :  { %v873_v28 = vpop.f32.mrf.mxu1 }
 0x79a   :  { %v727_v11 = vmax.f32 %v720_v26, %v725_v27 }
 0x79c   :  { %v728_v29 = vmax.f32 %v727_v11, 0.0 }
 0x79e   :  { %730 = vst.msk [vmem:[%s1138_s7] sm:$0xf] %vm729_vm1, %v728_v29 }

</bundles_post_ra>
